<compile_context>
chip_gen: v7x
topology: tpu7x:2x2x1
jax: 0.10.0
libtpu: 0.0.40
codegen_flags: <defaults>
</compile_context>

<pallas_src>
import functools

import jax
import jax.numpy as jnp
from jax import lax
from jax.experimental import pallas as pl
from jax.experimental.pallas import tpu as pltpu


# -----------------------------------------------------------------------------
# Kernels
# -----------------------------------------------------------------------------
def _revin_norm_kernel(x_ref, w_ref, b_ref, y_ref, stats_ref,
                       *, eps, affine, subtract_last):
    # x_ref: (bb, T, C) block covering bb batch elements.
    x = x_ref[...].astype(jnp.float32)

    # Two-pass statistics over time (biased variance, torch.var(unbiased=False)).
    mean = jnp.mean(x, axis=1, keepdims=True)                   # (bb, 1, C)
    xc = x - mean                                               # reused for y
    var = jnp.mean(xc * xc, axis=1, keepdims=True)              # (bb, 1, C)
    std = jnp.sqrt(var + eps)                                   # (bb, 1, C)
    inv_std = lax.rsqrt(var + eps)                              # EUP rsqrt

    # Location subtracted from x: last time step or the mean.
    loc = x[:, -1:, :] if subtract_last else mean               # (bb, 1, C)
    xl = (x - loc) if subtract_last else xc                     # (bb, T, C)

    # y = (x - loc) * (w / std) + b   (affine NOT folded into the offset: avoids
    # catastrophic cancellation when |loc| >> std).
    if affine:
        a = w_ref[...] * inv_std                                # (bb, 1, C)
        y = xl * a + b_ref[...]
    else:
        y = xl * inv_std

    y_ref[...] = y.astype(y_ref.dtype)
    # Single packed store of [loc; std] along the stats axis.
    stats_ref[...] = jnp.concatenate([loc, std], axis=1).astype(stats_ref.dtype)


def _revin_denorm_kernel(x_ref, stats_ref, w_ref, b_ref, y_ref, *, eps, affine):
    x = x_ref[...].astype(jnp.float32)                          # (bb, T, C)
    loc = stats_ref[:, 0:1, :]                                  # (bb, 1, C)
    std = stats_ref[:, 1:2, :]                                  # (bb, 1, C)

    # Reference math: ((x - b) / (w + eps^2)) * std + loc
    #   = (x - b) * a + loc  with  a = std / (w + eps^2)
    # Reciprocal only on the (1, 1, C) slice — no full-tensor divide.
    if affine:
        # NOTE: approx=True (EUP vrcp, ~2^-12 rel err) was considered per the
        # perf review, but it risks the 1e-4 round-trip tolerance; the exact
        # reciprocal on a (1,1,C) slice is negligible anyway.
        inv_w = pl.reciprocal(w_ref[...] + eps * eps, approx=False)  # (1, 1, C)
        a = std * inv_w                                              # (bb, 1, C)
        y = (x - b_ref[...]) * a + loc
    else:
        y = x * std + loc
    y_ref[...] = y.astype(y_ref.dtype)


# -----------------------------------------------------------------------------
# VMEM budgeting / block-size selection
# -----------------------------------------------------------------------------
def _cdiv(a, b):
    return (a + b - 1) // b


def _round_up(x, m):
    return _cdiv(x, m) * m


def _sublane(itemsize):
    # f32 -> 8, bf16 -> 16, int8/fp8 -> 32
    return max(8, 32 // max(int(itemsize), 1))


def _padded_row_bytes(T, C, itemsize):
    """Bytes of ONE (1, T, C) buffer in VMEM including (sublane,128) tile padding."""
    itemsize = max(int(itemsize), 1)
    return _round_up(T, _sublane(itemsize)) * _round_up(C, 128) * itemsize


def _vmem_limit_bytes():
    """~3/4 of physical VMEM: ~96 MiB on 128 MiB chips (v5e/v6e), ~48 MiB on v7x."""
    cap = None
    try:
        info = pltpu.get_tpu_info()
        for name in ("vmem_capacity_bytes", "vmem_bytes", "vmem_size_bytes"):
            cap = getattr(info, name, None)
            if cap:
                break
    except Exception:  # non-TPU / API drift: stay conservative.
        cap = None
    if not cap:
        cap = 64 * 1024 * 1024  # v7x per-TC VMEM (smallest current part)
    return max(32 * 1024 * 1024, (int(cap) * 3) // 4)


def _pick_bb(B, T, C, itemsize, n_f32_temps, vmem_limit):
    """Pick the batch block size bb.

    Counts the real padded VMEM footprint: 2x double-buffered input + 2x output
    buffers in x.dtype plus `n_f32_temps` full-block f32 temporaries.  Returns
    (bb, needs_pad): needs_pad means the wrapper must pad B to a multiple of bb.
    """
    row_io = _padded_row_bytes(T, C, itemsize)
    row_f32 = _padded_row_bytes(T, C, 4)
    per_row = 4 * row_io + n_f32_temps * row_f32
    budget = int(vmem_limit * 0.6)                      # headroom for scratch/spills
    bb = max(1, min(B, budget // max(per_row, 1)))

    # v7x megacore: aim for >= 4 grid steps (>= B steps for tiny B) so both
    # TensorCores get work; harmless (~0.35 us/step) on single-TC chips.
    min_steps = 4 if B >= 4 else B
    if min_steps >= 1:
        bb = max(1, min(bb, _cdiv(B, min_steps)))

    # Nudge toward an even number of grid steps (2 TCs on v7x).
    steps = _cdiv(B, bb)
    if steps >= 3 and steps % 2 == 1:
        bb = max(1, _cdiv(B, steps + 1))

    # Prefer a divisor of B near bb (no padding, no ragged block); otherwise
    # keep bb and pad the batch in the wrapper.
    d = bb
    while d > 1 and B % d:
        d -= 1
    if d >= max(1, bb // 2):
        return d, False
    return bb, True


def _compiler_params(vmem_limit):
    return pltpu.CompilerParams(
        dimension_semantics=("parallel",),
        vmem_limit_bytes=int(vmem_limit),
    )


def _prep_params(weight, bias, C):
    if weight is None:
        weight = jnp.ones((C,), dtype=jnp.float32)
    if bias is None:
        bias = jnp.zeros((C,), dtype=jnp.float32)
    w = jnp.asarray(weight, dtype=jnp.float32).reshape(1, 1, C)
    b = jnp.asarray(bias, dtype=jnp.float32).reshape(1, 1, C)
    return w, b


def _pad_batch(arr, B, Bp):
    if Bp == B:
        return arr
    pad = [(0, Bp - B)] + [(0, 0)] * (arr.ndim - 1)
    return jnp.pad(arr, pad)


# -----------------------------------------------------------------------------
# Wrappers
# -----------------------------------------------------------------------------
def revin_norm(x, weight=None, bias=None, *, eps=1e-5, affine=True,
               subtract_last=False):
    """RevIN forward, mode='norm', mask=None.

    Returns (y, stats) with stats of shape (B, 2, C) packing
    [loc; stdev] along axis 1, where loc is the per-(batch, channel) mean (or
    last value when subtract_last) and stdev = sqrt(var + eps).  `stats` is the
    state needed later by revin_denorm.
    """
    # TODO(synk): masked mean / stdev (mask is not None) not implemented.
    B, T, C = x.shape
    w, b = _prep_params(weight, bias, C)

    vmem_limit = _vmem_limit_bytes()
    bb, needs_pad = _pick_bb(B, T, C, x.dtype.itemsize, n_f32_temps=3,
                             vmem_limit=vmem_limit)
    Bp = _round_up(B, bb) if needs_pad else B
    xk = _pad_batch(x, B, Bp)
    grid = (Bp // bb,)

    kernel = functools.partial(
        _revin_norm_kernel, eps=eps, affine=affine, subtract_last=subtract_last)

    itemsize = x.dtype.itemsize
    cost = pl.CostEstimate(
        flops=int(6 * B * T * C),
        transcendentals=int(2 * B * C),
        bytes_accessed=int(2 * B * T * C * itemsize + B * 2 * C * 4 + 2 * C * 4),
    )

    y, stats = pl.pallas_call(
        kernel,
        out_shape=(
            jax.ShapeDtypeStruct((Bp, T, C), x.dtype),
            jax.ShapeDtypeStruct((Bp, 2, C), jnp.float32),   # packed [loc; std]
        ),
        grid_spec=pltpu.PrefetchScalarGridSpec(
            num_scalar_prefetch=0,
            grid=grid,
            in_specs=[
                pl.BlockSpec((bb, T, C), lambda i: (i, 0, 0)),
                pl.BlockSpec((1, 1, C), lambda i: (0, 0, 0)),
                pl.BlockSpec((1, 1, C), lambda i: (0, 0, 0)),
            ],
            out_specs=(
                pl.BlockSpec((bb, T, C), lambda i: (i, 0, 0)),
                pl.BlockSpec((bb, 2, C), lambda i: (i, 0, 0)),
            ),
        ),
        compiler_params=_compiler_params(vmem_limit),
        cost_estimate=cost,
    )(xk, w, b)

    if Bp != B:
        y = y[:B]
        stats = stats[:B]
    return y, stats


def revin_denorm(x, stats, weight=None, bias=None, *, eps=1e-5, affine=True):
    """RevIN forward, mode='denorm'.  `stats` is the packed (B, 2, C) [loc; std]
    array returned by revin_norm."""
    B, T, C = x.shape
    w, b = _prep_params(weight, bias, C)
    stats = jnp.asarray(stats, dtype=jnp.float32)

    vmem_limit = _vmem_limit_bytes()
    bb, needs_pad = _pick_bb(B, T, C, x.dtype.itemsize, n_f32_temps=2,
                             vmem_limit=vmem_limit)
    Bp = _round_up(B, bb) if needs_pad else B
    xk = _pad_batch(x, B, Bp)
    sk = _pad_batch(stats, B, Bp)
    grid = (Bp // bb,)

    kernel = functools.partial(_revin_denorm_kernel, eps=eps, affine=affine)

    itemsize = x.dtype.itemsize
    cost = pl.CostEstimate(
        flops=int(3 * B * T * C),
        transcendentals=int(C),
        bytes_accessed=int(2 * B * T * C * itemsize + B * 2 * C * 4 + 2 * C * 4),
    )

    y = pl.pallas_call(
        kernel,
        out_shape=jax.ShapeDtypeStruct((Bp, T, C), x.dtype),
        grid_spec=pltpu.PrefetchScalarGridSpec(
            num_scalar_prefetch=0,
            grid=grid,
            in_specs=[
                pl.BlockSpec((bb, T, C), lambda i: (i, 0, 0)),
                pl.BlockSpec((bb, 2, C), lambda i: (i, 0, 0)),
                pl.BlockSpec((1, 1, C), lambda i: (0, 0, 0)),
                pl.BlockSpec((1, 1, C), lambda i: (0, 0, 0)),
            ],
            out_specs=pl.BlockSpec((bb, T, C), lambda i: (i, 0, 0)),
        ),
        compiler_params=_compiler_params(vmem_limit),
        cost_estimate=cost,
    )(xk, sk, w, b)

    if Bp != B:
        y = y[:B]
    return y


# -----------------------------------------------------------------------------
# Pure-JAX reference (mirror of the PyTorch module, mask=None)
# -----------------------------------------------------------------------------
def _ref_norm(x, weight, bias, eps, affine, subtract_last):
    x32 = x.astype(jnp.float32)
    mean = jnp.mean(x32, axis=1, keepdims=True)
    var = jnp.var(x32, axis=1, keepdims=True)
    std = jnp.sqrt(var + eps)
    loc = x32[:, -1:, :] if subtract_last else mean
    y = (x32 - loc) / std
    if affine:
        y = y * weight.reshape(1, 1, -1) + bias.reshape(1, 1, -1)
    return y, loc, std


def _ref_denorm(x, loc, std, weight, bias, eps, affine):
    x32 = x.astype(jnp.float32)
    if affine:
        x32 = x32 - bias.reshape(1, 1, -1)
        x32 = x32 / (weight.reshape(1, 1, -1) + eps * eps)
    return x32 * std + loc


# -----------------------------------------------------------------------------
if __name__ == "__main__":
    B, T, C = 2, 8, 32          # (batch, seq, num_features)
    eps = 1e-5
    affine = True
    subtract_last = False

    key = jax.random.PRNGKey(0)
    x = jax.random.normal(key, (B, T, C), dtype=jnp.float32) * 3.0 + 1.5

    # Deterministic parameter init per RevIN._init_params: ones / zeros.
    affine_weight = jnp.ones((C,), dtype=jnp.float32)
    affine_bias = jnp.zeros((C,), dtype=jnp.float32)

    # mode='norm'
    y, stats = revin_norm(x, affine_weight, affine_bias,
                          eps=eps, affine=affine, subtract_last=subtract_last)
    y = jax.block_until_ready(y)
    loc = stats[:, 0:1, :]
    std = stats[:, 1:2, :]

    # mode='denorm' (round-trips back to x)
    x_rec = revin_denorm(y, stats, affine_weight, affine_bias,
                         eps=eps, affine=affine)
    x_rec = jax.block_until_ready(x_rec)

    # Check against pure-JAX reference of the PyTorch semantics.
    y_ref, loc_ref, std_ref = _ref_norm(x, affine_weight, affine_bias,
                                        eps, affine, subtract_last)
    x_rec_ref = _ref_denorm(y_ref, loc_ref, std_ref, affine_weight,
                            affine_bias, eps, affine)

    assert jnp.allclose(y, y_ref, atol=1e-5, rtol=1e-5)
    assert jnp.allclose(loc, loc_ref, atol=1e-5, rtol=1e-5)
    assert jnp.allclose(std, std_ref, atol=1e-5, rtol=1e-5)
    assert jnp.allclose(x_rec, x_rec_ref, atol=1e-4, rtol=1e-4)
    assert jnp.allclose(x_rec, x, atol=1e-3, rtol=1e-3)

    # Exercise the subtract_last path too.
    y2, stats2 = revin_norm(x, affine_weight, affine_bias,
                            eps=eps, affine=affine, subtract_last=True)
    y2 = jax.block_until_ready(y2)
    y2_ref, loc2_ref, std2_ref = _ref_norm(x, affine_weight, affine_bias,
                                           eps, affine, True)
    assert jnp.allclose(y2, y2_ref, atol=1e-5, rtol=1e-5)
    assert jnp.allclose(stats2[:, 0:1, :], loc2_ref, atol=1e-5, rtol=1e-5)
    assert jnp.allclose(stats2[:, 1:2, :], std2_ref, atol=1e-5, rtol=1e-5)
    x2_rec = revin_denorm(y2, stats2, affine_weight, affine_bias,
                          eps=eps, affine=affine)
    x2_rec = jax.block_until_ready(x2_rec)
    assert jnp.allclose(x2_rec, x, atol=1e-3, rtol=1e-3)

    print("KERNEL_OK")
</pallas_src>

<mosaic_0001>
module attributes {stable_mosaic.version = 11 : i64} {
  func.func @_revin_norm_kernel(%arg0: i32, %arg1: memref<1x8x32xf32, #tpu.memory_space<vmem>>, %arg2: memref<1x1x32xf32, #tpu.memory_space<vmem>>, %arg3: memref<1x1x32xf32, #tpu.memory_space<vmem>>, %arg4: memref<1x8x32xf32, #tpu.memory_space<vmem>>, %arg5: memref<1x2x32xf32, #tpu.memory_space<vmem>>) attributes {dimension_semantics = [#tpu.dimension_semantics<parallel>], iteration_bounds = array<i64: 2>, scalar_prefetch = 0 : i64, scratch_operands = 0 : i64, tpu.core_type = #tpu.core_type<tc>, window_params = [{transform_indices = @transform_0, window_bounds = array<i64: 1, 8, 32>}, {pipeline_mode = #tpu.pipeline_mode<synchronous>, transform_indices = @transform_1, window_bounds = array<i64: 1, 1, 32>}, {pipeline_mode = #tpu.pipeline_mode<synchronous>, transform_indices = @transform_2, window_bounds = array<i64: 1, 1, 32>}, {transform_indices = @transform_3, window_bounds = array<i64: 1, 8, 32>}, {transform_indices = @transform_4, window_bounds = array<i64: 1, 2, 32>}]} {
    %c0 = arith.constant 0 : index
    %c0_0 = arith.constant 0 : index
    %c0_1 = arith.constant 0 : index
    %0 = vector.load %arg1[%c0, %c0_0, %c0_1] : memref<1x8x32xf32, #tpu.memory_space<vmem>>, vector<1x8x32xf32>
    %cst = arith.constant dense<0.000000e+00> : vector<1x32xf32>
    %1 = vector.multi_reduction <add>, %0, %cst [1] : vector<1x8x32xf32> to vector<1x32xf32>
    %2 = vector.shape_cast %1 : vector<1x32xf32> to vector<1x1x32xf32>
    %cst_2 = arith.constant 8.000000e+00 : f32
    %3 = vector.broadcast %cst_2 : f32 to vector<1x1x32xf32>
    %4 = arith.divf %2, %3 : vector<1x1x32xf32>
    %5 = vector.broadcast %4 : vector<1x1x32xf32> to vector<1x8x32xf32>
    %6 = arith.subf %0, %5 : vector<1x8x32xf32>
    %7 = arith.mulf %6, %6 : vector<1x8x32xf32>
    %cst_3 = arith.constant dense<0.000000e+00> : vector<1x32xf32>
    %8 = vector.multi_reduction <add>, %7, %cst_3 [1] : vector<1x8x32xf32> to vector<1x32xf32>
    %9 = vector.shape_cast %8 : vector<1x32xf32> to vector<1x1x32xf32>
    %cst_4 = arith.constant 8.000000e+00 : f32
    %10 = vector.broadcast %cst_4 : f32 to vector<1x1x32xf32>
    %11 = arith.divf %9, %10 : vector<1x1x32xf32>
    %cst_5 = arith.constant 9.99999974E-6 : f32
    %12 = vector.broadcast %cst_5 : f32 to vector<1x1x32xf32>
    %13 = arith.addf %11, %12 : vector<1x1x32xf32>
    %14 = math.sqrt %13 : vector<1x1x32xf32>
    %cst_6 = arith.constant 9.99999974E-6 : f32
    %15 = vector.broadcast %cst_6 : f32 to vector<1x1x32xf32>
    %16 = arith.addf %11, %15 : vector<1x1x32xf32>
    %17 = math.rsqrt %16 : vector<1x1x32xf32>
    %c0_7 = arith.constant 0 : index
    %c0_8 = arith.constant 0 : index
    %c0_9 = arith.constant 0 : index
    %18 = vector.load %arg2[%c0_7, %c0_8, %c0_9] : memref<1x1x32xf32, #tpu.memory_space<vmem>>, vector<1x1x32xf32>
    %19 = arith.mulf %18, %17 : vector<1x1x32xf32>
    %20 = vector.broadcast %19 : vector<1x1x32xf32> to vector<1x8x32xf32>
    %21 = arith.mulf %6, %20 : vector<1x8x32xf32>
    %c0_10 = arith.constant 0 : index
    %c0_11 = arith.constant 0 : index
    %c0_12 = arith.constant 0 : index
    %22 = vector.load %arg3[%c0_10, %c0_11, %c0_12] : memref<1x1x32xf32, #tpu.memory_space<vmem>>, vector<1x1x32xf32>
    %23 = vector.broadcast %22 : vector<1x1x32xf32> to vector<1x8x32xf32>
    %24 = arith.addf %21, %23 : vector<1x8x32xf32>
    %c0_13 = arith.constant 0 : index
    %c0_14 = arith.constant 0 : index
    %c0_15 = arith.constant 0 : index
    %25 = vector.load %arg4[%c0_13, %c0_14, %c0_15] : memref<1x8x32xf32, #tpu.memory_space<vmem>>, vector<1x8x32xf32>
    tpu.vector_store %arg4[%c0_13, %c0_14, %c0_15], %24 {strides = array<i32>} : memref<1x8x32xf32, #tpu.memory_space<vmem>>, vector<1x8x32xf32>,
    %26 = tpu.concatenate %4, %14 in 1 : vector<1x1x32xf32>, vector<1x1x32xf32> -> vector<1x2x32xf32>
    %c0_16 = arith.constant 0 : index
    %c0_17 = arith.constant 0 : index
    %c0_18 = arith.constant 0 : index
    %27 = vector.load %arg5[%c0_16, %c0_17, %c0_18] : memref<1x2x32xf32, #tpu.memory_space<vmem>>, vector<1x2x32xf32>
    tpu.vector_store %arg5[%c0_16, %c0_17, %c0_18], %26 {strides = array<i32>} : memref<1x2x32xf32, #tpu.memory_space<vmem>>, vector<1x2x32xf32>,
    return
  }
  func.func @transform_0(%arg0: i32) -> (i32, i32, i32) {
    %c0_i32 = arith.constant 0 : i32
    %c0_i32_0 = arith.constant 0 : i32
    %c0_i32_1 = arith.constant 0 : i32
    return %arg0, %c0_i32, %c0_i32_0 : i32, i32, i32
  }
  func.func @transform_1(%arg0: i32) -> (i32, i32, i32) {
    %c0_i32 = arith.constant 0 : i32
    %c0_i32_0 = arith.constant 0 : i32
    %c0_i32_1 = arith.constant 0 : i32
    %c0_i32_2 = arith.constant 0 : i32
    return %c0_i32, %c0_i32_0, %c0_i32_1 : i32, i32, i32
  }
  func.func @transform_2(%arg0: i32) -> (i32, i32, i32) {
    %c0_i32 = arith.constant 0 : i32
    %c0_i32_0 = arith.constant 0 : i32
    %c0_i32_1 = arith.constant 0 : i32
    %c0_i32_2 = arith.constant 0 : i32
    return %c0_i32, %c0_i32_0, %c0_i32_1 : i32, i32, i32
  }
  func.func @transform_3(%arg0: i32) -> (i32, i32, i32) {
    %c0_i32 = arith.constant 0 : i32
    %c0_i32_0 = arith.constant 0 : i32
    %c0_i32_1 = arith.constant 0 : i32
    return %arg0, %c0_i32, %c0_i32_0 : i32, i32, i32
  }
  func.func @transform_4(%arg0: i32) -> (i32, i32, i32) {
    %c0_i32 = arith.constant 0 : i32
    %c0_i32_0 = arith.constant 0 : i32
    %c0_i32_1 = arith.constant 0 : i32
    return %arg0, %c0_i32, %c0_i32_0 : i32, i32, i32
  }
}

</mosaic_0001>

<bundles_post_ra>
// kernel: tpu_custom_call.1
= control target key start
LH: loop header
LB: loop body
LE: loop exit
PB: predicated region body
PF: predicated region fallthrough
CT: control target
= control target key end

     0   :  { %10 = vsyncpa [#allocation3], 0  ;;  %s846_s0 = inlined_call_operand.hbm [shape: f32[2,8,32], index: 0, kind: input, shape index: {}]   ;;  %s847_s1 = inlined_call_operand.vmem [shape: f32[1,1,32], index: 1, kind: input, shape index: {}]   ;;  %s848_s2 = inlined_call_operand.vmem [shape: f32[1,1,32], index: 2, kind: input, shape index: {}]   ;;  %s849_s3 = inlined_call_operand.hbm [shape: f32[2,8,32], index: 3, kind: output, shape index: {0}]   ;;  %s850_s4 = inlined_call_operand.hbm [shape: f32[2,2,32], index: 4, kind: output, shape index: {1}]  }
   0x1   :  { %12 = vsyncpa [#allocation3 + $0x1], 0 }
   0x2   :  { %13 = vsyncpa [#allocation4], 0 }
   0x3   :  { %15 = vsyncpa [#allocation4 + $0x1], 0 }
   0x4   :  { %16 = vsyncpa [#allocation7], 0 }
   0x5   :  { %18 = vsyncpa [#allocation7 + $0x1], 0  ;;  %s637_s15 = smov 0   ;;  %s639_s16 = smov 0  }
   0x6   :  { %s641_s17 = smov 0   ;;  %s643_s18 = smov 0  }
   0x7 LB: > { %s658_s19 = sadd.s32 4294967295, %s607_s18   ;;  %s410_s20 = sadd.s32 4294967294, %s607_s18   ;;  %s607_s18 = sphi %s643_s18, %s865_s18   ;;  %s603_s17 = sphi %s641_s17, %s864_s17   ;;  %s599_s16 = sphi %s639_s16, %s863_s16   ;;  %s595_s15 = sphi %s637_s15, %s862_s15  }
   0x8   : > { %s662_s21 = sadd.s32 1, %s607_s18   ;;  %s31_s22 = sadd.s32 1, %s603_s17 }
   0x9   : > { %s28_s23 = ssub.s32 %s607_s18, %s662_s21  ;;  %p38_p0 = scmp.ne.s32.totalorder %s603_s17, %s599_s16 }
   0xa   : > { %p29_p1 = scmp.eq.s32.totalorder %s28_s23, 0  ;;  %p39_p2 = scmp.eq.s32.totalorder %s607_s18, 0 }
   0xb   : > { %p44_p3 = scmp.ne.s32.totalorder %s599_s16, %s595_s15  ;;  %p45_p4 = scmp.eq.s32.totalorder %s658_s19, 0 }
   0xc   : > { %s674_s24 = scalar_select %p29_p1, %s603_s17, %s31_s22  }
   0xd   : > { %p676_p5 = por %p39_p2, %p38_p0  ;;  %p680_p6 = por %p45_p4, %p44_p3 }
   0xe   : > { %p110_p7 = scmp.eq.s32.totalorder %s658_s19, 1  ;;  %p116_p8 = scmp.eq.s32.totalorder %s410_s20, 1 }
   0xf   : > { %p443_p10 = scmp.lt.s32.totalorder %s607_s18, 2  ;;  %s168_s29 = sand.u32 1, %s603_s17  }
  0x10   : > { %p687_p11 = por %p110_p7, %p38_p0  ;;  %p691_p12 = por %p116_p8, %p44_p3 }
  0x11   : > { %s414_s30 = sshll.u32 %s607_s18, 7  ;;  %s413_s5 = sshll.u32 %s168_s29, 3 }
  0x12   : > { %s854_s27 = scalar_select %p687_p11, 1, 0 }
  0x13   : > { %s855_s28 = scalar_select %p691_p12, 1, 0 }
  0x14   : > { %s700_s8 = scalar_lea.hbm %s846_s0, %s414_s30  ;;  %s172_s9 = scalar_lea.vmem [#allocation2], %s413_s5 }
  0x15   : > { %s179_s10 = sshll.u32 %s172_s9, 4  ;;  %p704_p13 = pnand %p443_p10, %p676_p5  ;;  %s708_s10 = int_to_ptr.vmem [resolvable:$true] %s179_s10 }
  0x16   : > { %s169_s12 = scalar_lea.sflag [#allocation3], %s168_s29  ;;  %s479_s13 = scalar_lea.hbm %s700_s8, 128 }
  0x17   : > { %p480_p2 = scmp.ne.s32.totalorder %s700_s8, %s479_s13  ;;  %p481_p3 = pneg %p704_p13 }
  0x18   : > { %s484_s22 = scalar_lea.hbm %s846_s0, 256  ;;  %p485_p5 = scmp.lt.u32.totalorder %s700_s8, %s846_s0 }
  0x19   : > { %p482_p4 = pnand %p481_p3, %p480_p2  ;;  %p486_p8 = scmp.lt.u32.totalorder %s484_s22, %s479_s13 }
  0x1a   : > { %p488_p9 = scmp.lt.u32.totalorder %s479_s13, %s700_s8 }
  0x1b   : > { %p483_p7 = pneg %p482_p4  ;;  %p487_p10 = por %p486_p8, %p485_p5 }
  0x1d   : > { %p489_p0 = por %p488_p9, %p487_p10 }
  0x1f   : > { %p490_p1 = pnand %p489_p0, %p483_p7 }
  0x21   : > { %493 = shalt.err (!%p490_p1)
}
  0x22   : > { %s494_s29 = scalar_lea.vmem %s708_s10, 128  ;;  %s609_s30 = smov [#allocation2]  }
  0x23   : > { %p495_p2 = scmp.ne.s32.totalorder %s708_s10, %s494_s29  ;;  %s499_s5 = sshll.u32 %s609_s30, 4  ;;  %s500_s5 = int_to_ptr.vmem [resolvable:$false] %s499_s5 }
  0x24   : > { %s501_s6 = scalar_lea.vmem %s500_s5, 256  ;;  %p502_p11 = scmp.lt.s32.totalorder %s708_s10, %s500_s5 }
  0x25   : > { %p497_p4 = pnand %p495_p2, %p481_p3  ;;  %p503_p5 = scmp.lt.s32.totalorder %s501_s6, %s494_s29 }
  0x27   : > { %p498_p12 = pneg %p497_p4  ;;  %p504_p8 = por %p503_p5, %p502_p11 }
  0x29   : > { %p505_p9 = pnand %p504_p8, %p498_p12 }
  0x2b   : > { %508 = shalt.err (!%p505_p9)
}
  0x2c   : > { %435 = dma.hbm_to_vmem [thread:$0]  (!%p704_p13), %s700_s8, 128, %s708_s10, %s169_s12  }
  0x2d   : > { %p857_p0 = scmp.lt.s32.totalorder %s607_s18, 3  ;;  %p858_p1 = scmp.ge.s32.totalorder %s607_s18, 1 }
  0x2f   : > { %p185_p3 = pnand %p858_p1, %p857_p0 }
  0x30   : > { %s742_s7 = sand.u32 (!%p185_p3), 1, %s599_s16  }
  0x31   : > { %188 = sbr.rel (%p185_p3) target bundleno = 148 (0x94), region = 32  ;;  %s416_s9 = sshll.u32 (!%p185_p3), %s742_s7, 3 }
  0x32   : > { %s191_s13 = scalar_lea.sflag (!%p185_p3), [#allocation3], %s742_s7  ;;  %s194_s11 = scalar_lea.vmem (!%p185_p3), [#allocation2], %s416_s9 }
  0x38   : > { %582 = dma.done.wait (%p680_p6), %s191_s13, 128  }
  0x39   : > { %584 = vsyncadd (%p680_p6), %s191_s13, 4294967168  ;;  %vm225_vm0 = vcmask 261120   ;;  %v224_v0 = vld [vmem:[%s194_s11] sm:$0xff]  ;;  %v257_v20 = vlaneseq  ;;  %s418_s26 = sshll.u32 %s742_s7, 1  ;;  %s423_s20 = sshll.u32 %s658_s19, 5  ;;  %vm272_vm3 = vcmask 1040384  }
  0x3a   : > { %v226_v1 = vsel %vm225_vm0, %v224_v0, 0.0  ;;  %v254_v22 = vld [vmem:[%s847_s1] sm:$0x1]  ;;  %s223_s12 = scalar_lea.vmem [#allocation6], %s418_s26  ;;  %s761_s22 = scalar_lea.vmem [#allocation5], %s416_s9  ;;  %vm274_vm4 = vcmask 254976  }
  0x3b   : > { %v227_v2 = vrot.slane %v226_v1, 4  ;;  %v258_v21 = vshrl.u32 %v257_v20, 7  ;;  %s308_s14 = sshll.u32 %s223_s12, 4  ;;  %s295_s23 = sshll.u32 %s761_s22, 4  ;;  %v419_v30 = vld [vmem:[%s848_s2] ss:$0 sm:$0xff]  ;;  %s764_s14 = int_to_ptr.vmem [resolvable:$true] %s308_s14  ;;  %s775_s23 = int_to_ptr.vmem [resolvable:$true] %s295_s23 }
  0x3c   : > { %s422_s25 = sshll.u32 %s658_s19, 7  ;;  %s773_s9 = scalar_lea.hbm %s850_s4, %s423_s20 }
  0x3d   : > { %v228_v3 = vadd.f32 %v227_v2, %v226_v1  ;;  %v259_v23 = vsub.s32 0, %v258_v21  ;;  %s780_s19 = scalar_lea.hbm %s849_s3, %s422_s25  ;;  %s282_s26 = scalar_lea.sflag [#allocation7], %s742_s7 }
  0x3e   : > { %s509_s8 = scalar_lea.vmem %s764_s14, 32  ;;  %p859_p11 = scmp.ne.s32.totalorder %s854_s27, 0 }
  0x3f   : > { %v229_v4 = vrot.slane %v228_v3, 2  ;;  %p510_p6 = scmp.ne.s32.totalorder %s764_s14, %s509_s8  ;;  %s610_s10 = smov [#allocation6]  }
  0x40   : > { %s513_s20 = sshll.u32 %s610_s10, 4  ;;  %s514_s20 = int_to_ptr.vmem [resolvable:$false] %s513_s20 }
  0x41   : > { %v230_v5 = vadd.f32 %v229_v4, %v228_v3  ;;  %p511_p12 = pnand %p510_p6, %p859_p11  ;;  %s515_s29 = scalar_lea.vmem %s514_s20, 64 }
  0x42   : > { %p516_p7 = scmp.lt.s32.totalorder %s764_s14, %s514_s20  ;;  %p517_p10 = scmp.lt.s32.totalorder %s515_s29, %s509_s8 }
  0x43   : > { %v231_v6 = vrot.slane %v230_v5, 1  ;;  %p512_p13 = pneg %p511_p12 }
  0x44   : > { %p518_p2 = por %p517_p10, %p516_p7 }
  0x45   : > { %v232_v7 = vadd.f32 %v231_v6, %v230_v5 }
  0x46   : > { %p519_p4 = pnand %p518_p2, %p512_p13 }
  0x47   : > { %v234_v8 = vmul.f32 0.125, %v232_v7 }
  0x49   : > { %v235_v9 = vsub.f32 %v224_v0, %v234_v8 }
  0x4b   : > { %v236_v10 = vmul.f32 %v235_v9, %v235_v9 }
  0x4d   : > { %v237_v11 = vsel %vm225_vm0, %v236_v10, 0.0 }
  0x4e   : > { %v238_v12 = vrot.slane %v237_v11, 4 }
  0x50   : > { %v239_v13 = vadd.f32 %v238_v12, %v237_v11 }
  0x52   : > { %v240_v14 = vrot.slane %v239_v13, 2 }
  0x54   : > { %v241_v15 = vadd.f32 %v240_v14, %v239_v13 }
  0x56   : > { %v242_v16 = vrot.slane %v241_v15, 1 }
  0x58   : > { %v243_v17 = vadd.f32 %v242_v16, %v241_v15 }
  0x5a   : > { %v244_v18 = vmul.f32 0.125, %v243_v17 }
  0x5c   : > { %v245_v19 = vadd.f32 1e-05, %v244_v18 }
  0x5e   : > { %477 = vrsqrt.f32 %v245_v19  ;;  %vm248_vm1 = vcmp.eq.f32.partialorder %v245_v19, inf  ;;  %v251_v25 = vand.u32 2147483648, %v245_v19  ;;  %vm250_vm2 = vcmp.eq.f32.partialorder %v245_v19, 0.0 }
  0x68   : > { %v478_v24 = vpop.eup %477 }
  0x69   : > { %v255_v26 = vmul.f32 %v478_v24, %v254_v22  ;;  %v247_v27 = vmul.f32 %v478_v24, %v245_v19 }
  0x6b   : > { %v260_v28 = vrot.slane %v255_v26, %v259_v23  ;;  %v249_v29 = vsel %vm248_vm1, %v245_v19, %v247_v27 }
  0x6c   : > { %v252_v31 = vsel %vm250_vm2, %v251_v25, %v249_v29 }
  0x6d   : > { %v262_v32 = vmul.f32 %v260_v28, %v235_v9  ;;  %v273_v33 = vsel %vm272_vm3, %v234_v8, %v252_v31 }
  0x6e   : > { %275 = vst.msk [vmem:[%s223_s12] sm:$0x3] %vm274_vm4, %v273_v33 }
  0x6f   : > { %v270_v34 = vadd.f32 %v419_v30, %v262_v32 }
  0x70   : > { %522 = shalt.err (!%p519_p4)
}
  0x71   : > { %s523_s12 = scalar_lea.hbm %s773_s9, 32  ;;  %s527_s5 = scalar_lea.hbm %s850_s4, 64 }
  0x72   : > { %p524_p5 = scmp.ne.s32.totalorder %s773_s9, %s523_s12  ;;  %p528_p0 = scmp.lt.u32.totalorder %s773_s9, %s850_s4 }
  0x73   : > { %p529_p1 = scmp.lt.u32.totalorder %s527_s5, %s523_s12  ;;  %p531_p6 = scmp.lt.u32.totalorder %s523_s12, %s773_s9 }
  0x74   : > { %p525_p8 = pnand %p524_p5, %p859_p11 }
  0x75   : > { %p530_p3 = por %p529_p1, %p528_p0 }
  0x76   : > { %p526_p9 = pneg %p525_p8 }
  0x77   : > { %p532_p12 = por %p531_p6, %p530_p3 }
  0x79   : > { %p533_p13 = pnand %p532_p12, %p526_p9 }
  0x7b   : > { %536 = shalt.err (!%p533_p13)
}
  0x7c   : > { %429 = dma.vmem_to_hbm [thread:$0]  (%p859_p11), %s764_s14, 32, %s773_s9, %s282_s26   ;;  %271 = vst.msk [vmem:[%s761_s22] sm:$0xff] %vm225_vm0, %v270_v34 }
  0x7d   : > { %s277_s11 = scalar_lea.sflag [#allocation4], %s742_s7  ;;  %s537_s8 = scalar_lea.vmem %s775_s23, 128 }
  0x7e   : > { %p538_p7 = scmp.ne.s32.totalorder %s775_s23, %s537_s8  ;;  %s611_s10 = smov [#allocation5]  }
  0x7f   : > { %s541_s20 = sshll.u32 %s611_s10, 4  ;;  %s542_s20 = int_to_ptr.vmem [resolvable:$false] %s541_s20 }
  0x80   : > { %p539_p10 = pnand %p538_p7, %p859_p11  ;;  %s543_s29 = scalar_lea.vmem %s542_s20, 256 }
  0x81   : > { %p544_p4 = scmp.lt.s32.totalorder %s775_s23, %s542_s20  ;;  %p545_p5 = scmp.lt.s32.totalorder %s543_s29, %s537_s8 }
  0x82   : > { %p540_p2 = pneg %p539_p10 }
  0x83   : > { %p546_p8 = por %p545_p5, %p544_p4 }
  0x85   : > { %p547_p9 = pnand %p546_p8, %p540_p2 }
  0x87   : > { %550 = shalt.err (!%p547_p9)
}
  0x88   : > { %s551_s7 = scalar_lea.hbm %s780_s19, 128  ;;  %s555_s9 = scalar_lea.hbm %s849_s3, 256 }
  0x89   : > { %p552_p0 = scmp.ne.s32.totalorder %s780_s19, %s551_s7  ;;  %p556_p6 = scmp.lt.u32.totalorder %s780_s19, %s849_s3 }
  0x8a   : > { %p557_p12 = scmp.lt.u32.totalorder %s555_s9, %s551_s7  ;;  %p559_p7 = scmp.lt.u32.totalorder %s551_s7, %s780_s19 }
  0x8b   : > { %p553_p1 = pnand %p552_p0, %p859_p11 }
  0x8c   : > { %p558_p13 = por %p557_p12, %p556_p6 }
  0x8d   : > { %p554_p3 = pneg %p553_p1 }
  0x8e   : > { %p560_p10 = por %p559_p7, %p558_p13 }
  0x90   : > { %p561_p2 = pnand %p560_p10, %p554_p3 }
  0x92   : > { %564 = shalt.err (!%p561_p2)
}
  0x93   : > { %428 = dma.vmem_to_hbm [thread:$0]  (%p859_p11), %s775_s23, 128, %s780_s19, %s277_s11  }
  0x94 PF: > { %s320_s25 = sand.u32 1, %s595_s15   ;;  %p860_p4 = scmp.ne.s32.totalorder %s855_s28, 0 }
  0x95   : > { %p861_p5 = scmp.ge.s32.totalorder %s607_s18, 2  ;;  %s321_s30 = scalar_lea.sflag [#allocation4], %s320_s25 }
  0x97   : > { %p437_p8 = pnand %p861_p5, %p860_p4 }
  0x99   : > { %586 = dma.done.wait (!%p437_p8), %s321_s30, 128  }
  0x9a   : > { %588 = vsyncadd (!%p437_p8), %s321_s30, 4294967168  ;;  %s330_s5 = scalar_lea.sflag [#allocation7], %s320_s25 }
  0x9b   : > { %590 = dma.done.wait (!%p437_p8), %s330_s5, 32  }
  0x9c   : > { %592 = vsyncadd (!%p437_p8), %s330_s5, 4294967264  ;;  %p21_p11 = scmp.ge.s32.totalorder %s662_s21, 4   ;;  %s862_s15 = smov %s599_s16 }
  0x9d   : > { %s863_s16 = smov %s603_s17  ;;  %s864_s17 = smov %s674_s24 }
  0x9e   : > { %s865_s18 = smov %s662_s21  ;;  %23 = sbr.rel (!%p21_p11) target bundleno = 7 (0x7), region = 94 }
  0xa5   :  { %335 = vsyncpa [#allocation3], 1 }
  0xa6   :  { %337 = vsyncpa [#allocation3 + $0x1], 1 }
  0xa7   :  { %338 = vsyncpa [#allocation4], 1 }
  0xa8   :  { %340 = vsyncpa [#allocation4 + $0x1], 1 }
  0xa9   :  { %341 = vsyncpa [#allocation7], 1 }
  0xaa   :  { %343 = vsyncpa [#allocation7 + $0x1], 1 }

</bundles_post_ra>
